<compile_context>
chip_gen: v5e
topology: v5e:2x2
jax: 0.10.0
libtpu: 0.0.40
codegen_flags: <defaults>
</compile_context>

<pallas_src>
import functools
import math

import jax
import jax.numpy as jnp
from jax.experimental import pallas as pl
from jax.experimental.pallas import tpu as pltpu

LOG_SIG_MAX = 2.0
LOG_SIG_MIN = -20.0


def _round_up(x, m):
    return ((x + m - 1) // m) * m


def gaussian_policy_kernel(
    state_ref,   # [tb, in_pad]        bf16
    w1_ref,      # [in_pad, hid_pad]   bf16
    b1_ref,      # [1, hid_pad]        f32
    w2_ref,      # [hid_pad, hid_pad]  bf16
    b2_ref,      # [1, hid_pad]        f32
    wh_ref,      # [hid_pad, head_pad] bf16  (wm | ws | zero-pad)
    bh_ref,      # [1, head_pad]       f32
    out_ref,     # [tb, head_pad]      f32   (mean | log_std | pad)
    *,
    num_actions: int,
):
    x = state_ref[...]

    # linear1 + relu (bf16 operands, f32 accumulate)
    h1 = jnp.dot(x, w1_ref[...], preferred_element_type=jnp.float32) + b1_ref[...]
    h1 = jnp.maximum(h1, 0.0).astype(jnp.bfloat16)

    # linear2 + relu
    h2 = jnp.dot(h1, w2_ref[...], preferred_element_type=jnp.float32) + b2_ref[...]
    h2 = jnp.maximum(h2, 0.0).astype(jnp.bfloat16)

    # fused mean|log_std heads: one matmul, one lane-dense store.
    head = jnp.dot(h2, wh_ref[...], preferred_element_type=jnp.float32) + bh_ref[...]

    # Clamp only the log_std half (columns >= num_actions); padded tail columns
    # also get clamped, harmless — sliced away outside. This iota/clip/select is
    # VALU filler under MXU slack, so it is left in-kernel.
    col = jax.lax.broadcasted_iota(jnp.int32, head.shape, dimension=1)
    clamped = jnp.clip(head, LOG_SIG_MIN, LOG_SIG_MAX)
    out_ref[...] = jnp.where(col < num_actions, head, clamped).astype(out_ref.dtype)


def pack_params(raw, *, pad_multiple=128):
    """Pad all dims to lane multiples, fuse the two heads, cast weights to bf16.

    Use pad_multiple=256 on v6e when hidden is not already 256-aligned.
    """
    num_inputs, hidden = raw["w1"].shape
    num_actions = raw["wm"].shape[1]
    in_pad = _round_up(num_inputs, pad_multiple)
    hid_pad = _round_up(hidden, pad_multiple)
    head_pad = _round_up(2 * num_actions, 128)

    def pad2(a, rows, cols, dtype):
        return jnp.pad(a, ((0, rows - a.shape[0]), (0, cols - a.shape[1]))).astype(dtype)

    wh = jnp.concatenate([raw["wm"], raw["ws"]], axis=1)
    bh = jnp.concatenate([raw["bm"], raw["bs"]], axis=1)
    return {
        "w1": pad2(raw["w1"], in_pad, hid_pad, jnp.bfloat16),
        "b1": pad2(raw["b1"], 1, hid_pad, jnp.float32),
        "w2": pad2(raw["w2"], hid_pad, hid_pad, jnp.bfloat16),
        "b2": pad2(raw["b2"], 1, hid_pad, jnp.float32),
        "wh": pad2(wh, hid_pad, head_pad, jnp.bfloat16),
        "bh": pad2(bh, 1, head_pad, jnp.float32),
        "num_inputs": num_inputs,
        "num_actions": num_actions,
    }


def _batch_tiling(B, tile_b):
    """Choose (tile_rows, padded_batch, n_tiles). Tiles are balanced and
    16-row aligned; >=2 tiles when there is enough work (v7x: 2 TensorCores)."""
    n_tiles = max(1, -(-B // tile_b))
    if n_tiles == 1 and B >= 128:
        n_tiles = 2
    tb = _round_up(-(-B // n_tiles), 16)
    return tb, n_tiles * tb, n_tiles


def gaussian_policy_forward(state, packed, *, tile_b=512):
    """Runs the fused MLP forward. Returns (mean, log_std)."""
    B, num_inputs = state.shape
    assert num_inputs == packed["num_inputs"]
    in_pad, hid_pad = packed["w1"].shape
    head_pad = packed["wh"].shape[1]
    num_actions = packed["num_actions"]

    tb, Bp, n_tiles = _batch_tiling(B, tile_b)
    state_p = jnp.pad(
        state, ((0, Bp - B), (0, in_pad - num_inputs))
    ).astype(jnp.bfloat16)
    grid = (n_tiles,)

    flops = 2 * Bp * (in_pad * hid_pad + hid_pad * hid_pad + hid_pad * head_pad)
    bytes_accessed = (
        2 * (Bp * in_pad + in_pad * hid_pad + hid_pad * hid_pad + hid_pad * head_pad)
        + 4 * (2 * hid_pad + head_pad)
        + 4 * Bp * head_pad
    )

    # VMEM budget: single-buffered bf16 weights + double-buffered state/out
    # tiles + f32 intermediates, 2x headroom, clamped to [32 MiB, 64 MiB].
    weight_bytes = 2 * (in_pad * hid_pad + hid_pad * hid_pad + hid_pad * head_pad)
    bias_bytes = 4 * (2 * hid_pad + head_pad)
    stream_bytes = 2 * (tb * in_pad * 2 + tb * head_pad * 4)
    interm_bytes = 3 * tb * hid_pad * 4
    vmem_needed = 2 * weight_bytes + bias_bytes + stream_bytes + interm_bytes
    vmem_limit = int(min(max(2 * vmem_needed, 32 * 1024 * 1024), 64 * 1024 * 1024))

    kernel_fn = functools.partial(gaussian_policy_kernel, num_actions=num_actions)
    args = (state_p, packed["w1"], packed["b1"], packed["w2"], packed["b2"],
            packed["wh"], packed["bh"])

    def run(single_buffer_weights):
        # Weights never change across grid steps -> single-buffer them so their
        # VMEM footprint isn't doubled (frees room for larger batch tiles).
        wkw = {"pipeline_mode": pl.Buffered(1)} if single_buffer_weights else {}
        in_specs = [
            pl.BlockSpec((tb, in_pad), lambda i: (i, 0)),
            pl.BlockSpec((in_pad, hid_pad), lambda i: (0, 0), **wkw),
            pl.BlockSpec((1, hid_pad), lambda i: (0, 0), **wkw),
            pl.BlockSpec((hid_pad, hid_pad), lambda i: (0, 0), **wkw),
            pl.BlockSpec((1, hid_pad), lambda i: (0, 0), **wkw),
            pl.BlockSpec((hid_pad, head_pad), lambda i: (0, 0), **wkw),
            pl.BlockSpec((1, head_pad), lambda i: (0, 0), **wkw),
        ]
        out = pl.pallas_call(
            kernel_fn,
            out_shape=jax.ShapeDtypeStruct((Bp, head_pad), jnp.float32),
            grid=grid,
            in_specs=in_specs,
            out_specs=pl.BlockSpec((tb, head_pad), lambda i: (i, 0)),
            compiler_params=pltpu.CompilerParams(
                dimension_semantics=("parallel",),
                vmem_limit_bytes=vmem_limit),
            cost_estimate=pl.CostEstimate(
                flops=flops, transcendentals=0, bytes_accessed=bytes_accessed),
        )(*args)
        return jax.block_until_ready(out)

    try:
        out = run(True)
    except Exception:
        # Fallback: default double-buffering if this JAX build rejects
        # pipeline_mode=pl.Buffered(1).
        out = run(False)

    mean = out[:B, :num_actions]
    log_std = out[:B, num_actions:2 * num_actions]
    return mean, log_std


def xavier_uniform(key, fan_in, fan_out, gain=1.0, dtype=jnp.float32):
    # Matches torch.nn.init.xavier_uniform_ (torch weight shape [out, in]);
    # stored transposed as [in, out] for the kernel, bounds are identical.
    bound = gain * math.sqrt(6.0 / (fan_in + fan_out))
    return jax.random.uniform(key, (fan_in, fan_out), dtype, minval=-bound, maxval=bound)


def init_params(key, num_inputs, num_actions, hidden_dim):
    k1, k2, k3, k4 = jax.random.split(key, 4)
    return {
        "w1": xavier_uniform(k1, num_inputs, hidden_dim),
        "b1": jnp.zeros((1, hidden_dim), jnp.float32),
        "w2": xavier_uniform(k2, hidden_dim, hidden_dim),
        "b2": jnp.zeros((1, hidden_dim), jnp.float32),
        "wm": xavier_uniform(k3, hidden_dim, num_actions),
        "bm": jnp.zeros((1, num_actions), jnp.float32),
        "ws": xavier_uniform(k4, hidden_dim, num_actions),
        "bs": jnp.zeros((1, num_actions), jnp.float32),
    }


def reference_forward(state, raw):
    """Pure-JAX reference emulating the kernel's bf16-operand / f32-accumulate
    numerics (zero-padding does not change the math)."""
    def mm(x, w):
        return jnp.dot(x.astype(jnp.bfloat16), w.astype(jnp.bfloat16),
                       preferred_element_type=jnp.float32)
    h = jnp.maximum(mm(state, raw["w1"]) + raw["b1"], 0.0)
    h = jnp.maximum(mm(h, raw["w2"]) + raw["b2"], 0.0)
    ref_mean = mm(h, raw["wm"]) + raw["bm"]
    ref_log_std = jnp.clip(mm(h, raw["ws"]) + raw["bs"], LOG_SIG_MIN, LOG_SIG_MAX)
    return ref_mean, ref_log_std


if __name__ == "__main__":
    num_inputs, num_actions, hidden_dim = 16, 8, 32

    key = jax.random.PRNGKey(0)
    pkey, skey, bkey = jax.random.split(key, 3)
    raw = init_params(pkey, num_inputs, num_actions, hidden_dim)
    packed = pack_params(raw)

    # Small-batch path (single grid step).
    batch = 2
    state = jax.random.normal(skey, (batch, num_inputs), jnp.float32)
    mean, log_std = gaussian_policy_forward(state, packed)
    jax.block_until_ready((mean, log_std))

    ref_mean, ref_log_std = reference_forward(state, raw)
    assert mean.shape == (batch, num_actions) and log_std.shape == (batch, num_actions)
    assert jnp.allclose(mean, ref_mean, atol=1e-3, rtol=1e-3)
    assert jnp.allclose(log_std, ref_log_std, atol=1e-3, rtol=1e-3)

    # Larger-batch path (exercises the balanced 2-tile "parallel" batch grid).
    big_batch = 300
    big_state = jax.random.normal(bkey, (big_batch, num_inputs), jnp.float32)
    big_mean, big_log_std = gaussian_policy_forward(big_state, packed)
    jax.block_until_ready((big_mean, big_log_std))

    big_ref_mean, big_ref_log_std = reference_forward(big_state, raw)
    assert big_mean.shape == (big_batch, num_actions)
    assert jnp.allclose(big_mean, big_ref_mean, atol=1e-3, rtol=1e-3)
    assert jnp.allclose(big_log_std, big_ref_log_std, atol=1e-3, rtol=1e-3)

    # TODO(synk): fuse the GaussianPolicy.sample() epilogue (exp/tanh/log_prob
    # with pltpu.prng_random_bits) into this kernel so mean/log_std never
    # round-trip HBM on the SAC hot path; forward() semantics only here.

    print("KERNEL_OK")
</pallas_src>

<mosaic_0001>
module attributes {stable_mosaic.version = 11 : i64} {
  func.func @gaussian_policy_kernel(%arg0: i32, %arg1: memref<16x128xbf16, #tpu.memory_space<vmem>>, %arg2: memref<128x128xbf16, #tpu.memory_space<vmem>>, %arg3: memref<1x128xf32, #tpu.memory_space<vmem>>, %arg4: memref<128x128xbf16, #tpu.memory_space<vmem>>, %arg5: memref<1x128xf32, #tpu.memory_space<vmem>>, %arg6: memref<128x128xbf16, #tpu.memory_space<vmem>>, %arg7: memref<1x128xf32, #tpu.memory_space<vmem>>, %arg8: memref<16x128xf32, #tpu.memory_space<vmem>>) attributes {dimension_semantics = [#tpu.dimension_semantics<parallel>], iteration_bounds = array<i64: 1>, scalar_prefetch = 0 : i64, scratch_operands = 0 : i64, tpu.core_type = #tpu.core_type<tc>, window_params = [{transform_indices = @transform_0, window_bounds = array<i64: 16, 128>}, {pipeline_mode = #tpu.pipeline_mode<synchronous>, transform_indices = @transform_1, window_bounds = array<i64: 128, 128>}, {pipeline_mode = #tpu.pipeline_mode<synchronous>, transform_indices = @transform_2, window_bounds = array<i64: 1, 128>}, {pipeline_mode = #tpu.pipeline_mode<synchronous>, transform_indices = @transform_3, window_bounds = array<i64: 128, 128>}, {pipeline_mode = #tpu.pipeline_mode<synchronous>, transform_indices = @transform_4, window_bounds = array<i64: 1, 128>}, {pipeline_mode = #tpu.pipeline_mode<synchronous>, transform_indices = @transform_5, window_bounds = array<i64: 128, 128>}, {pipeline_mode = #tpu.pipeline_mode<synchronous>, transform_indices = @transform_6, window_bounds = array<i64: 1, 128>}, {transform_indices = @transform_7, window_bounds = array<i64: 16, 128>}]} {
    %c0 = arith.constant 0 : index
    %c0_0 = arith.constant 0 : index
    %0 = vector.load %arg1[%c0, %c0_0] : memref<16x128xbf16, #tpu.memory_space<vmem>>, vector<16x128xbf16>
    %c0_1 = arith.constant 0 : index
    %c0_2 = arith.constant 0 : index
    %1 = vector.load %arg2[%c0_1, %c0_2] : memref<128x128xbf16, #tpu.memory_space<vmem>>, vector<128x128xbf16>
    %cst = arith.constant dense<0.000000e+00> : vector<16x128xf32>
    %2 = tpu.matmul %0, %1, %cst {dimension_numbers = #tpu.dot_dimension_numbers<[1], [0], [0], [1], [0, 0, 1, 1], [], []>} : vector<16x128xbf16>, vector<128x128xbf16>, vector<16x128xf32> -> vector<16x128xf32>
    %c0_3 = arith.constant 0 : index
    %c0_4 = arith.constant 0 : index
    %3 = vector.load %arg3[%c0_3, %c0_4] : memref<1x128xf32, #tpu.memory_space<vmem>>, vector<1x128xf32>
    %4 = vector.broadcast %3 : vector<1x128xf32> to vector<16x128xf32>
    %5 = arith.addf %2, %4 : vector<16x128xf32>
    %cst_5 = arith.constant 0.000000e+00 : f32
    %6 = vector.broadcast %cst_5 : f32 to vector<16x128xf32>
    %7 = arith.maximumf %5, %6 : vector<16x128xf32>
    %8 = arith.truncf %7 : vector<16x128xf32> to vector<16x128xbf16>
    %c0_6 = arith.constant 0 : index
    %c0_7 = arith.constant 0 : index
    %9 = vector.load %arg4[%c0_6, %c0_7] : memref<128x128xbf16, #tpu.memory_space<vmem>>, vector<128x128xbf16>
    %cst_8 = arith.constant dense<0.000000e+00> : vector<16x128xf32>
    %10 = tpu.matmul %8, %9, %cst_8 {dimension_numbers = #tpu.dot_dimension_numbers<[1], [0], [0], [1], [0, 0, 1, 1], [], []>} : vector<16x128xbf16>, vector<128x128xbf16>, vector<16x128xf32> -> vector<16x128xf32>
    %c0_9 = arith.constant 0 : index
    %c0_10 = arith.constant 0 : index
    %11 = vector.load %arg5[%c0_9, %c0_10] : memref<1x128xf32, #tpu.memory_space<vmem>>, vector<1x128xf32>
    %12 = vector.broadcast %11 : vector<1x128xf32> to vector<16x128xf32>
    %13 = arith.addf %10, %12 : vector<16x128xf32>
    %cst_11 = arith.constant 0.000000e+00 : f32
    %14 = vector.broadcast %cst_11 : f32 to vector<16x128xf32>
    %15 = arith.maximumf %13, %14 : vector<16x128xf32>
    %16 = arith.truncf %15 : vector<16x128xf32> to vector<16x128xbf16>
    %c0_12 = arith.constant 0 : index
    %c0_13 = arith.constant 0 : index
    %17 = vector.load %arg6[%c0_12, %c0_13] : memref<128x128xbf16, #tpu.memory_space<vmem>>, vector<128x128xbf16>
    %cst_14 = arith.constant dense<0.000000e+00> : vector<16x128xf32>
    %18 = tpu.matmul %16, %17, %cst_14 {dimension_numbers = #tpu.dot_dimension_numbers<[1], [0], [0], [1], [0, 0, 1, 1], [], []>} : vector<16x128xbf16>, vector<128x128xbf16>, vector<16x128xf32> -> vector<16x128xf32>
    %c0_15 = arith.constant 0 : index
    %c0_16 = arith.constant 0 : index
    %19 = vector.load %arg7[%c0_15, %c0_16] : memref<1x128xf32, #tpu.memory_space<vmem>>, vector<1x128xf32>
    %20 = vector.broadcast %19 : vector<1x128xf32> to vector<16x128xf32>
    %21 = arith.addf %18, %20 : vector<16x128xf32>
    %22 = tpu.iota {dimensions = array<i32: 1>} : vector<16x128xi32>
    %cst_17 = arith.constant -2.000000e+01 : f32
    %cst_18 = arith.constant 2.000000e+00 : f32
    %23 = vector.broadcast %cst_17 : f32 to vector<16x128xf32>
    %24 = arith.maximumf %23, %21 : vector<16x128xf32>
    %25 = vector.broadcast %cst_18 : f32 to vector<16x128xf32>
    %26 = arith.minimumf %25, %24 : vector<16x128xf32>
    %c8_i32 = arith.constant 8 : i32
    %27 = vector.broadcast %c8_i32 : i32 to vector<16x128xi32>
    %28 = arith.cmpi slt, %22, %27 : vector<16x128xi32>
    %29 = arith.select %28, %21, %26 : vector<16x128xi1>, vector<16x128xf32>
    %c0_19 = arith.constant 0 : index
    %c0_20 = arith.constant 0 : index
    %30 = vector.load %arg8[%c0_19, %c0_20] : memref<16x128xf32, #tpu.memory_space<vmem>>, vector<16x128xf32>
    tpu.vector_store %arg8[%c0_19, %c0_20], %29 {strides = array<i32>} : memref<16x128xf32, #tpu.memory_space<vmem>>, vector<16x128xf32>,
    return
  }
  func.func @transform_0(%arg0: i32) -> (i32, i32) {
    %c0_i32 = arith.constant 0 : i32
    %c0_i32_0 = arith.constant 0 : i32
    return %arg0, %c0_i32 : i32, i32
  }
  func.func @transform_1(%arg0: i32) -> (i32, i32) {
    %c0_i32 = arith.constant 0 : i32
    %c0_i32_0 = arith.constant 0 : i32
    %c0_i32_1 = arith.constant 0 : i32
    return %c0_i32, %c0_i32_0 : i32, i32
  }
  func.func @transform_2(%arg0: i32) -> (i32, i32) {
    %c0_i32 = arith.constant 0 : i32
    %c0_i32_0 = arith.constant 0 : i32
    %c0_i32_1 = arith.constant 0 : i32
    return %c0_i32, %c0_i32_0 : i32, i32
  }
  func.func @transform_3(%arg0: i32) -> (i32, i32) {
    %c0_i32 = arith.constant 0 : i32
    %c0_i32_0 = arith.constant 0 : i32
    %c0_i32_1 = arith.constant 0 : i32
    return %c0_i32, %c0_i32_0 : i32, i32
  }
  func.func @transform_4(%arg0: i32) -> (i32, i32) {
    %c0_i32 = arith.constant 0 : i32
    %c0_i32_0 = arith.constant 0 : i32
    %c0_i32_1 = arith.constant 0 : i32
    return %c0_i32, %c0_i32_0 : i32, i32
  }
  func.func @transform_5(%arg0: i32) -> (i32, i32) {
    %c0_i32 = arith.constant 0 : i32
    %c0_i32_0 = arith.constant 0 : i32
    %c0_i32_1 = arith.constant 0 : i32
    return %c0_i32, %c0_i32_0 : i32, i32
  }
  func.func @transform_6(%arg0: i32) -> (i32, i32) {
    %c0_i32 = arith.constant 0 : i32
    %c0_i32_0 = arith.constant 0 : i32
    %c0_i32_1 = arith.constant 0 : i32
    return %c0_i32, %c0_i32_0 : i32, i32
  }
  func.func @transform_7(%arg0: i32) -> (i32, i32) {
    %c0_i32 = arith.constant 0 : i32
    %c0_i32_0 = arith.constant 0 : i32
    return %arg0, %c0_i32 : i32, i32
  }
}

module attributes {stable_mosaic.version = 11 : i64} {
  func.func @gaussian_policy_kernel(%arg0: i32, %arg1: memref<16x128xbf16, #tpu.memory_space<vmem>>, %arg2: memref<128x128xbf16, #tpu.memory_space<vmem>>, %arg3: memref<1x128xf32, #tpu.memory_space<vmem>>, %arg4: memref<128x128xbf16, #tpu.memory_space<vmem>>, %arg5: memref<1x128xf32, #tpu.memory_space<vmem>>, %arg6: memref<128x128xbf16, #tpu.memory_space<vmem>>, %arg7: memref<1x128xf32, #tpu.memory_space<vmem>>, %arg8: memref<16x128xf32, #tpu.memory_space<vmem>>) attributes {dimension_semantics = [#tpu.dimension_semantics<parallel>], iteration_bounds = array<i64: 1>, scalar_prefetch = 0 : i64, scratch_operands = 0 : i64, tpu.core_type = #tpu.core_type<tc>, window_params = [{transform_indices = @transform_0, window_bounds = array<i64: 16, 128>}, {pipeline_mode = #tpu.pipeline_mode<synchronous>, transform_indices = @transform_1, window_bounds = array<i64: 128, 128>}, {pipeline_mode = #tpu.pipeline_mode<synchronous>, transform_indices = @transform_2, window_bounds = array<i64: 1, 128>}, {pipeline_mode = #tpu.pipeline_mode<synchronous>, transform_indices = @transform_3, window_bounds = array<i64: 128, 128>}, {pipeline_mode = #tpu.pipeline_mode<synchronous>, transform_indices = @transform_4, window_bounds = array<i64: 1, 128>}, {pipeline_mode = #tpu.pipeline_mode<synchronous>, transform_indices = @transform_5, window_bounds = array<i64: 128, 128>}, {pipeline_mode = #tpu.pipeline_mode<synchronous>, transform_indices = @transform_6, window_bounds = array<i64: 1, 128>}, {transform_indices = @transform_7, window_bounds = array<i64: 16, 128>}]} {
    %c0 = arith.constant 0 : index
    %c0_0 = arith.constant 0 : index
    %0 = vector.load %arg1[%c0, %c0_0] : memref<16x128xbf16, #tpu.memory_space<vmem>>, vector<16x128xbf16>
    %c0_1 = arith.constant 0 : index
    %c0_2 = arith.constant 0 : index
    %1 = vector.load %arg2[%c0_1, %c0_2] : memref<128x128xbf16, #tpu.memory_space<vmem>>, vector<128x128xbf16>
    %cst = arith.constant dense<0.000000e+00> : vector<16x128xf32>
    %2 = tpu.matmul %0, %1, %cst {dimension_numbers = #tpu.dot_dimension_numbers<[1], [0], [0], [1], [0, 0, 1, 1], [], []>} : vector<16x128xbf16>, vector<128x128xbf16>, vector<16x128xf32> -> vector<16x128xf32>
    %c0_3 = arith.constant 0 : index
    %c0_4 = arith.constant 0 : index
    %3 = vector.load %arg3[%c0_3, %c0_4] : memref<1x128xf32, #tpu.memory_space<vmem>>, vector<1x128xf32>
    %4 = vector.broadcast %3 : vector<1x128xf32> to vector<16x128xf32>
    %5 = arith.addf %2, %4 : vector<16x128xf32>
    %cst_5 = arith.constant 0.000000e+00 : f32
    %6 = vector.broadcast %cst_5 : f32 to vector<16x128xf32>
    %7 = arith.maximumf %5, %6 : vector<16x128xf32>
    %8 = arith.truncf %7 : vector<16x128xf32> to vector<16x128xbf16>
    %c0_6 = arith.constant 0 : index
    %c0_7 = arith.constant 0 : index
    %9 = vector.load %arg4[%c0_6, %c0_7] : memref<128x128xbf16, #tpu.memory_space<vmem>>, vector<128x128xbf16>
    %cst_8 = arith.constant dense<0.000000e+00> : vector<16x128xf32>
    %10 = tpu.matmul %8, %9, %cst_8 {dimension_numbers = #tpu.dot_dimension_numbers<[1], [0], [0], [1], [0, 0, 1, 1], [], []>} : vector<16x128xbf16>, vector<128x128xbf16>, vector<16x128xf32> -> vector<16x128xf32>
    %c0_9 = arith.constant 0 : index
    %c0_10 = arith.constant 0 : index
    %11 = vector.load %arg5[%c0_9, %c0_10] : memref<1x128xf32, #tpu.memory_space<vmem>>, vector<1x128xf32>
    %12 = vector.broadcast %11 : vector<1x128xf32> to vector<16x128xf32>
    %13 = arith.addf %10, %12 : vector<16x128xf32>
    %cst_11 = arith.constant 0.000000e+00 : f32
    %14 = vector.broadcast %cst_11 : f32 to vector<16x128xf32>
    %15 = arith.maximumf %13, %14 : vector<16x128xf32>
    %16 = arith.truncf %15 : vector<16x128xf32> to vector<16x128xbf16>
    %c0_12 = arith.constant 0 : index
    %c0_13 = arith.constant 0 : index
    %17 = vector.load %arg6[%c0_12, %c0_13] : memref<128x128xbf16, #tpu.memory_space<vmem>>, vector<128x128xbf16>
    %cst_14 = arith.constant dense<0.000000e+00> : vector<16x128xf32>
    %18 = tpu.matmul %16, %17, %cst_14 {dimension_numbers = #tpu.dot_dimension_numbers<[1], [0], [0], [1], [0, 0, 1, 1], [], []>} : vector<16x128xbf16>, vector<128x128xbf16>, vector<16x128xf32> -> vector<16x128xf32>
    %c0_15 = arith.constant 0 : index
    %c0_16 = arith.constant 0 : index
    %19 = vector.load %arg7[%c0_15, %c0_16] : memref<1x128xf32, #tpu.memory_space<vmem>>, vector<1x128xf32>
    %20 = vector.broadcast %19 : vector<1x128xf32> to vector<16x128xf32>
    %21 = arith.addf %18, %20 : vector<16x128xf32>
    %22 = tpu.iota {dimensions = array<i32: 1>} : vector<16x128xi32>
    %cst_17 = arith.constant -2.000000e+01 : f32
    %cst_18 = arith.constant 2.000000e+00 : f32
    %23 = vector.broadcast %cst_17 : f32 to vector<16x128xf32>
    %24 = arith.maximumf %23, %21 : vector<16x128xf32>
    %25 = vector.broadcast %cst_18 : f32 to vector<16x128xf32>
    %26 = arith.minimumf %25, %24 : vector<16x128xf32>
    %c8_i32 = arith.constant 8 : i32
    %27 = vector.broadcast %c8_i32 : i32 to vector<16x128xi32>
    %28 = arith.cmpi slt, %22, %27 : vector<16x128xi32>
    %29 = arith.select %28, %21, %26 : vector<16x128xi1>, vector<16x128xf32>
    %c0_19 = arith.constant 0 : index
    %c0_20 = arith.constant 0 : index
    %30 = vector.load %arg8[%c0_19, %c0_20] : memref<16x128xf32, #tpu.memory_space<vmem>>, vector<16x128xf32>
    tpu.vector_store %arg8[%c0_19, %c0_20], %29 {strides = array<i32>} : memref<16x128xf32, #tpu.memory_space<vmem>>, vector<16x128xf32>,
    return
  }
  func.func @transform_0(%arg0: i32) -> (i32, i32) {
    %c0_i32 = arith.constant 0 : i32
    %c0_i32_0 = arith.constant 0 : i32
    return %arg0, %c0_i32 : i32, i32
  }
  func.func @transform_1(%arg0: i32) -> (i32, i32) {
    %c0_i32 = arith.constant 0 : i32
    %c0_i32_0 = arith.constant 0 : i32
    %c0_i32_1 = arith.constant 0 : i32
    return %c0_i32, %c0_i32_0 : i32, i32
  }
  func.func @transform_2(%arg0: i32) -> (i32, i32) {
    %c0_i32 = arith.constant 0 : i32
    %c0_i32_0 = arith.constant 0 : i32
    %c0_i32_1 = arith.constant 0 : i32
    return %c0_i32, %c0_i32_0 : i32, i32
  }
  func.func @transform_3(%arg0: i32) -> (i32, i32) {
    %c0_i32 = arith.constant 0 : i32
    %c0_i32_0 = arith.constant 0 : i32
    %c0_i32_1 = arith.constant 0 : i32
    return %c0_i32, %c0_i32_0 : i32, i32
  }
  func.func @transform_4(%arg0: i32) -> (i32, i32) {
    %c0_i32 = arith.constant 0 : i32
    %c0_i32_0 = arith.constant 0 : i32
    %c0_i32_1 = arith.constant 0 : i32
    return %c0_i32, %c0_i32_0 : i32, i32
  }
  func.func @transform_5(%arg0: i32) -> (i32, i32) {
    %c0_i32 = arith.constant 0 : i32
    %c0_i32_0 = arith.constant 0 : i32
    %c0_i32_1 = arith.constant 0 : i32
    return %c0_i32, %c0_i32_0 : i32, i32
  }
  func.func @transform_6(%arg0: i32) -> (i32, i32) {
    %c0_i32 = arith.constant 0 : i32
    %c0_i32_0 = arith.constant 0 : i32
    %c0_i32_1 = arith.constant 0 : i32
    return %c0_i32, %c0_i32_0 : i32, i32
  }
  func.func @transform_7(%arg0: i32) -> (i32, i32) {
    %c0_i32 = arith.constant 0 : i32
    %c0_i32_0 = arith.constant 0 : i32
    return %arg0, %c0_i32 : i32, i32
  }
}

</mosaic_0001>

<bundles_post_ra>
// kernel: tpu_custom_call.1
= control target key start
LH: loop header
LB: loop body
LE: loop exit
PB: predicated region body
PF: predicated region fallthrough
CT: control target
= control target key end

     0   :  { %12 = vsyncpa [#allocation3], 0  ;;  %s720_s0 = inlined_call_operand.hbm [shape: bf16[16,128], index: 0, kind: input, shape index: {}]   ;;  %s721_s1 = inlined_call_operand.hbm [shape: bf16[128,128], index: 1, kind: input, shape index: {}]   ;;  %s722_s2 = inlined_call_operand.vmem [shape: f32[1,128], index: 2, kind: input, shape index: {}]   ;;  %s723_s3 = inlined_call_operand.hbm [shape: bf16[128,128], index: 3, kind: input, shape index: {}]   ;;  %s724_s4 = inlined_call_operand.vmem [shape: f32[1,128], index: 4, kind: input, shape index: {}]   ;;  %s725_s5 = inlined_call_operand.hbm [shape: bf16[128,128], index: 5, kind: input, shape index: {}]   ;;  %s726_s6 = inlined_call_operand.vmem [shape: f32[1,128], index: 6, kind: input, shape index: {}]   ;;  %s727_s7 = inlined_call_operand.hbm [shape: f32[16,128], index: 7, kind: output, shape index: {}]  }
   0x1   :  { %13 = vsyncpa [#allocation6], 0 }
   0x2   :  { %14 = vsyncpa [#allocation9], 0 }
   0x3   :  { %15 = vsyncpa [#allocation4], 0  ;;  %s33_s26 = sshll.u32 %s721_s1, 4  ;;  %s647_s27 = smov [#allocation5]   ;;  %s34_s26 = int_to_ptr.hbm [resolvable:$true] %s33_s26 }
   0x4   :  { %s35_s28 = sshll.u32 %s647_s27, 4  ;;  %s20_s8 = sshll.u32 %s720_s0, 4  ;;  %s36_s28 = int_to_ptr.vmem [resolvable:$true] %s35_s28  ;;  %s21_s8 = int_to_ptr.hbm [resolvable:$true] %s20_s8 }
   0x5   :  { %s648_s9 = smov 64   ;;  %s649_s10 = smov 4  }
   0x6   :  { %41 = dma.hbm_to_vmem [thread:$0]  %s34_s26, 1024, %s36_s28, [#allocation6], %s648_s9, %s648_s9, %s649_s10  }
   0x7   :  { %s650_s11 = smov [#allocation2]   ;;  %s48_s15 = sshll.u32 %s723_s3, 4  ;;  %s49_s15 = int_to_ptr.hbm [resolvable:$true] %s48_s15 }
   0x8   :  { %s22_s12 = sshll.u32 %s650_s11, 4  ;;  %s63_s17 = sshll.u32 %s725_s5, 4  ;;  %s23_s12 = int_to_ptr.vmem [resolvable:$true] %s22_s12  ;;  %s64_s17 = int_to_ptr.hbm [resolvable:$true] %s63_s17 }
   0x9   :  { %28 = dma.hbm_to_vmem [thread:$0]  %s21_s8, 128, %s23_s12, [#allocation3], %s648_s9, %s648_s9, %s649_s10  }
   0xa   :  { %s651_s18 = smov [#allocation7]   ;;  %s652_s0 = smov [#allocation8]  }
   0xb   :  { %s50_s19 = sshll.u32 %s651_s18, 4  ;;  %s65_s20 = sshll.u32 %s652_s0, 4  ;;  %s51_s19 = int_to_ptr.vmem [resolvable:$true] %s50_s19  ;;  %s66_s20 = int_to_ptr.vmem [resolvable:$true] %s65_s20 }
   0xc   :  { %56 = dma.hbm_to_vmem [thread:$0]  %s49_s15, 1024, %s51_s19, [#allocation6], %s648_s9, %s648_s9, %s649_s10  }
   0xd   :  { %71 = dma.hbm_to_vmem [thread:$0]  %s64_s17, 1024, %s66_s20, [#allocation9], %s648_s9, %s648_s9, %s649_s10  }
   0xe   :  { %639 = dma.done.wait [#allocation3], 128  }
   0xf   :  { %640 = vsyncadd [#allocation3], 4294967168 }
  0x10   :  { %641 = dma.done.wait [#allocation6], 2048  }
  0x11   :  { %642 = vsyncadd [#allocation6], 4294965248 }
  0x12   :  { %643 = dma.done.wait [#allocation9], 1024  }
  0x13   :  { %644 = vsyncadd [#allocation9], 4294966272  ;;  %v490_v0 = vld [vmem:[#allocation5 + $0x38] sm:$0xff]  ;;  %v489_v1 = vld [vmem:[#allocation5 + $0x30] sm:$0xff]  ;;  %v350_v41 = vlaneseq  ;;  %s367_s27 = sshll.u32 %s727_s7, 4  ;;  %s655_s28 = smov 8   ;;  %s368_s27 = int_to_ptr.hbm [resolvable:$true] %s367_s27 }
  0x14   :  { %166 = vmatpush.bf16.msra.mxu0 %v490_v0  ;;  %v498_v2 = vld [vmem:[#allocation7 + $0x38] sm:$0xff]  ;;  %v497_v3 = vld [vmem:[#allocation7 + $0x30] sm:$0xff]  ;;  %v488_v4 = vld [vmem:[#allocation5 + $0x28] sm:$0xff] }
  0x15   :  { %251 = vmatpush.bf16.msra.mxu1 %v498_v2  ;;  %v496_v5 = vld [vmem:[#allocation7 + $0x28] sm:$0xff]  ;;  %v487_v6 = vld [vmem:[#allocation5 + $0x20] sm:$0xff]  ;;  %v486_v8 = vld [vmem:[#allocation5 + $0x18] sm:$0xff]  ;;  %v351_v44 = vand.u32 127, %v350_v41 }
  0x16   :  { %v495_v7 = vld [vmem:[#allocation7 + $0x20] sm:$0xff]  ;;  %v485_v9 = vld [vmem:[#allocation5 + $0x10] sm:$0xff]  ;;  %v484_v10 = vld [vmem:[#allocation5 + $0x8] sm:$0xff] }
  0x17   :  { %v483_v11 = vld [vmem:[#allocation5] sm:$0xff]  ;;  %v482_v12 = vld [vmem:[#allocation2] sm:$0xff]  ;;  %v493_v14 = vld [vmem:[#allocation7 + $0x10] sm:$0xff]  ;;  %vm356_vm0 = vcmp.lt.s32.totalorder %v351_v44, 8 }
  0x18   :  { %167 = vmatpush.bf16.msra.mxu0 %v489_v1  ;;  %v494_v13 = vld [vmem:[#allocation7 + $0x18] sm:$0xff]  ;;  %v492_v15 = vld [vmem:[#allocation7 + $0x8] sm:$0xff]  ;;  %v491_v16 = vld [vmem:[#allocation7] sm:$0xff] }
  0x19   :  { %252 = vmatpush.bf16.msra.mxu1 %v497_v3  ;;  %v506_v17 = vld [vmem:[#allocation8 + $0x38] sm:$0xff]  ;;  %v505_v18 = vld [vmem:[#allocation8 + $0x30] sm:$0xff]  ;;  %v504_v19 = vld [vmem:[#allocation8 + $0x28] sm:$0xff] }
  0x1a   :  { %336 = vmatpush.bf16.msra.mxu2 %v506_v17  ;;  %v503_v20 = vld [vmem:[#allocation8 + $0x20] sm:$0xff]  ;;  %v516_v22 = vld [vmem:[%s722_s2] ss:$0 sm:$0xff]  ;;  %v501_v30 = vld [vmem:[#allocation8 + $0x10] sm:$0xff] }
  0x1b   :  { %v502_v29 = vld [vmem:[#allocation8 + $0x18] sm:$0xff]  ;;  %v500_v31 = vld [vmem:[#allocation8 + $0x8] sm:$0xff]  ;;  %v499_v32 = vld [vmem:[#allocation8] sm:$0xff] }
  0x1c   :  { %168 = vmatpush.bf16.msra.mxu0 %v488_v4  ;;  %v517_v34 = vld [vmem:[%s724_s4] ss:$0 sm:$0xff]  ;;  %s653_s4 = smov [#allocation10]  }
  0x1d   :  { %253 = vmatpush.bf16.msra.mxu1 %v496_v5  ;;  %v518_v42 = vld [vmem:[%s726_s6] ss:$0 sm:$0xff]  ;;  %s365_s24 = sshll.u32 %s653_s4, 4  ;;  %s654_s6 = smov 128   ;;  %s366_s24 = int_to_ptr.vmem [resolvable:$true] %s365_s24 }
  0x1e   :  { %337 = vmatpush.bf16.msra.mxu2 %v505_v18 }
  0x20   :  { %169 = vmatpush.bf16.msra.mxu0 %v487_v6 }
  0x21   :  { %254 = vmatpush.bf16.msra.mxu1 %v495_v7 }
  0x22   :  { %338 = vmatpush.bf16.msra.mxu2 %v504_v19 }
  0x24   :  { %170 = vmatpush.bf16.msra.mxu0 %v486_v8 }
  0x25   :  { %255 = vmatpush.bf16.msra.mxu1 %v494_v13 }
  0x26   :  { %339 = vmatpush.bf16.msra.mxu2 %v503_v20 }
  0x28   :  { %171 = vmatpush.bf16.msra.mxu0 %v485_v9 }
  0x29   :  { %256 = vmatpush.bf16.msra.mxu1 %v493_v14 }
  0x2a   :  { %340 = vmatpush.bf16.msra.mxu2 %v502_v29 }
  0x2c   :  { %172 = vmatpush.bf16.msra.mxu0 %v484_v10 }
  0x2d   :  { %257 = vmatpush.bf16.msra.mxu1 %v492_v15 }
  0x2e   :  { %341 = vmatpush.bf16.msra.mxu2 %v501_v30 }
  0x30   :  { %173 = vmatpush.bf16.msra.mxu0 %v483_v11 }
  0x31   :  { %258 = vmatpush.bf16.msra.mxu1 %v491_v16 }
  0x32   :  { %342 = vmatpush.bf16.msra.mxu2 %v500_v31 }
  0x33   :  { %174 = vmatmul.bf16.vlgmr.msra.gmra.mxu0 %v482_v12 }
  0x36   :  { %343 = vmatpush.bf16.msra.mxu2 %v499_v32 }
  0xb0   :  { %v175_v21 = vpop.f32.mrf.mxu0 }
  0xb1   :  { %v176_v23 = vadd.f32 %v516_v22, %v175_v21 }
  0xb3   :  { %v180_v26 = vmax.f32 %v176_v23, 0.0 }
  0xb8   :  { %v177_v24 = vpop.f32.mrf.mxu0 }
  0xb9   :  { %v178_v25 = vadd.f32 %v516_v22, %v177_v24 }
  0xbb   :  { %v181_v27 = vmax.f32 %v178_v25, 0.0 }
  0xbd   :  { %v182_v28 = vpack.c.bf16 %v181_v27, %v180_v26 }
  0xbf   :  { %259 = vmatmul.bf16.vlgmr.msra.gmra.mxu1 %v182_v28 }
 0x13c   :  { %v260_v33 = vpop.f32.mrf.mxu1 }
 0x13d   :  { %v261_v35 = vadd.f32 %v517_v34, %v260_v33 }
 0x13f   :  { %v265_v38 = vmax.f32 %v261_v35, 0.0 }
 0x144   :  { %v262_v36 = vpop.f32.mrf.mxu1 }
 0x145   :  { %v263_v37 = vadd.f32 %v517_v34, %v262_v36 }
 0x147   :  { %v266_v39 = vmax.f32 %v263_v37, 0.0 }
 0x149   :  { %v267_v40 = vpack.c.bf16 %v266_v39, %v265_v38 }
 0x14b   :  { %344 = vmatmul.bf16.vlgmr.msra.gmra.mxu2 %v267_v40 }
 0x1ce   :  { %v345_v43 = vpop.f32.mrf.mxu2 }
 0x1cf   :  { %v346_v45 = vadd.f32 %v518_v42, %v345_v43 }
 0x1d1   :  { %v352_v46 = vmax.f32 %v346_v45, -20.0 }
 0x1d3   :  { %v354_v47 = vmin.f32 %v352_v46, 2.0 }
 0x1d5   :  { %v357_v48 = vsel %vm356_vm0, %v346_v45, %v354_v47 }
 0x1d6   :  { %359 = vst [vmem:[#allocation10] sm:$0xff] %v357_v48  ;;  %v347_v49 = vpop.f32.mrf.mxu2 }
 0x1d7   :  { %v348_v50 = vadd.f32 %v518_v42, %v347_v49 }
 0x1d9   :  { %v353_v51 = vmax.f32 %v348_v50, -20.0 }
 0x1db   :  { %v355_v52 = vmin.f32 %v353_v51, 2.0 }
 0x1dd   :  { %v358_v53 = vsel %vm356_vm0, %v348_v50, %v355_v52 }
 0x1de   :  { %360 = vst [vmem:[#allocation10 + $0x8] sm:$0xff] %v358_v53 }
 0x1df   :  { %373 = dma.vmem_to_hbm [thread:$0]  %s366_s24, 256, %s368_s27, [#allocation4], %s654_s6, %s654_s6, %s655_s28  }
 0x1e0   :  { %645 = dma.done.wait [#allocation4], 256  }
 0x1e1   :  { %646 = vsyncadd [#allocation4], 4294967040 }
 0x1e2   :  { %378 = vsyncpa [#allocation3], 1 }
 0x1e3   :  { %379 = vsyncpa [#allocation6], 1 }
 0x1e4   :  { %380 = vsyncpa [#allocation9], 1 }
 0x1e5   :  { %381 = vsyncpa [#allocation4], 1 }

// kernel: tpu_custom_call.1
= control target key start
LH: loop header
LB: loop body
LE: loop exit
PB: predicated region body
PF: predicated region fallthrough
CT: control target
= control target key end

     0   :  { %12 = vsyncpa [#allocation3], 0  ;;  %s720_s0 = inlined_call_operand.hbm [shape: bf16[16,128], index: 0, kind: input, shape index: {}]   ;;  %s721_s1 = inlined_call_operand.hbm [shape: bf16[128,128], index: 1, kind: input, shape index: {}]   ;;  %s722_s2 = inlined_call_operand.vmem [shape: f32[1,128], index: 2, kind: input, shape index: {}]   ;;  %s723_s3 = inlined_call_operand.hbm [shape: bf16[128,128], index: 3, kind: input, shape index: {}]   ;;  %s724_s4 = inlined_call_operand.vmem [shape: f32[1,128], index: 4, kind: input, shape index: {}]   ;;  %s725_s5 = inlined_call_operand.hbm [shape: bf16[128,128], index: 5, kind: input, shape index: {}]   ;;  %s726_s6 = inlined_call_operand.vmem [shape: f32[1,128], index: 6, kind: input, shape index: {}]   ;;  %s727_s7 = inlined_call_operand.hbm [shape: f32[16,128], index: 7, kind: output, shape index: {}]  }
   0x1   :  { %13 = vsyncpa [#allocation6], 0 }
   0x2   :  { %14 = vsyncpa [#allocation9], 0 }
   0x3   :  { %15 = vsyncpa [#allocation4], 0  ;;  %s33_s26 = sshll.u32 %s721_s1, 4  ;;  %s647_s27 = smov [#allocation5]   ;;  %s34_s26 = int_to_ptr.hbm [resolvable:$true] %s33_s26 }
   0x4   :  { %s35_s28 = sshll.u32 %s647_s27, 4  ;;  %s20_s8 = sshll.u32 %s720_s0, 4  ;;  %s36_s28 = int_to_ptr.vmem [resolvable:$true] %s35_s28  ;;  %s21_s8 = int_to_ptr.hbm [resolvable:$true] %s20_s8 }
   0x5   :  { %s648_s9 = smov 64   ;;  %s649_s10 = smov 4  }
   0x6   :  { %41 = dma.hbm_to_vmem [thread:$0]  %s34_s26, 1024, %s36_s28, [#allocation6], %s648_s9, %s648_s9, %s649_s10  }
   0x7   :  { %s650_s11 = smov [#allocation2]   ;;  %s48_s15 = sshll.u32 %s723_s3, 4  ;;  %s49_s15 = int_to_ptr.hbm [resolvable:$true] %s48_s15 }
   0x8   :  { %s22_s12 = sshll.u32 %s650_s11, 4  ;;  %s63_s17 = sshll.u32 %s725_s5, 4  ;;  %s23_s12 = int_to_ptr.vmem [resolvable:$true] %s22_s12  ;;  %s64_s17 = int_to_ptr.hbm [resolvable:$true] %s63_s17 }
   0x9   :  { %28 = dma.hbm_to_vmem [thread:$0]  %s21_s8, 128, %s23_s12, [#allocation3], %s648_s9, %s648_s9, %s649_s10  }
   0xa   :  { %s651_s18 = smov [#allocation7]   ;;  %s652_s0 = smov [#allocation8]  }
   0xb   :  { %s50_s19 = sshll.u32 %s651_s18, 4  ;;  %s65_s20 = sshll.u32 %s652_s0, 4  ;;  %s51_s19 = int_to_ptr.vmem [resolvable:$true] %s50_s19  ;;  %s66_s20 = int_to_ptr.vmem [resolvable:$true] %s65_s20 }
   0xc   :  { %56 = dma.hbm_to_vmem [thread:$0]  %s49_s15, 1024, %s51_s19, [#allocation6], %s648_s9, %s648_s9, %s649_s10  }
   0xd   :  { %71 = dma.hbm_to_vmem [thread:$0]  %s64_s17, 1024, %s66_s20, [#allocation9], %s648_s9, %s648_s9, %s649_s10  }
   0xe   :  { %639 = dma.done.wait [#allocation3], 128  }
   0xf   :  { %640 = vsyncadd [#allocation3], 4294967168 }
  0x10   :  { %641 = dma.done.wait [#allocation6], 2048  }
  0x11   :  { %642 = vsyncadd [#allocation6], 4294965248 }
  0x12   :  { %643 = dma.done.wait [#allocation9], 1024  }
  0x13   :  { %644 = vsyncadd [#allocation9], 4294966272  ;;  %v490_v0 = vld [vmem:[#allocation5 + $0x38] sm:$0xff]  ;;  %v489_v1 = vld [vmem:[#allocation5 + $0x30] sm:$0xff]  ;;  %v350_v41 = vlaneseq  ;;  %s367_s27 = sshll.u32 %s727_s7, 4  ;;  %s655_s28 = smov 8   ;;  %s368_s27 = int_to_ptr.hbm [resolvable:$true] %s367_s27 }
  0x14   :  { %166 = vmatpush.bf16.msra.mxu0 %v490_v0  ;;  %v498_v2 = vld [vmem:[#allocation7 + $0x38] sm:$0xff]  ;;  %v497_v3 = vld [vmem:[#allocation7 + $0x30] sm:$0xff]  ;;  %v488_v4 = vld [vmem:[#allocation5 + $0x28] sm:$0xff] }
  0x15   :  { %251 = vmatpush.bf16.msra.mxu1 %v498_v2  ;;  %v496_v5 = vld [vmem:[#allocation7 + $0x28] sm:$0xff]  ;;  %v487_v6 = vld [vmem:[#allocation5 + $0x20] sm:$0xff]  ;;  %v486_v8 = vld [vmem:[#allocation5 + $0x18] sm:$0xff]  ;;  %v351_v44 = vand.u32 127, %v350_v41 }
  0x16   :  { %v495_v7 = vld [vmem:[#allocation7 + $0x20] sm:$0xff]  ;;  %v485_v9 = vld [vmem:[#allocation5 + $0x10] sm:$0xff]  ;;  %v484_v10 = vld [vmem:[#allocation5 + $0x8] sm:$0xff] }
  0x17   :  { %v483_v11 = vld [vmem:[#allocation5] sm:$0xff]  ;;  %v482_v12 = vld [vmem:[#allocation2] sm:$0xff]  ;;  %v493_v14 = vld [vmem:[#allocation7 + $0x10] sm:$0xff]  ;;  %vm356_vm0 = vcmp.lt.s32.totalorder %v351_v44, 8 }
  0x18   :  { %167 = vmatpush.bf16.msra.mxu0 %v489_v1  ;;  %v494_v13 = vld [vmem:[#allocation7 + $0x18] sm:$0xff]  ;;  %v492_v15 = vld [vmem:[#allocation7 + $0x8] sm:$0xff]  ;;  %v491_v16 = vld [vmem:[#allocation7] sm:$0xff] }
  0x19   :  { %252 = vmatpush.bf16.msra.mxu1 %v497_v3  ;;  %v506_v17 = vld [vmem:[#allocation8 + $0x38] sm:$0xff]  ;;  %v505_v18 = vld [vmem:[#allocation8 + $0x30] sm:$0xff]  ;;  %v504_v19 = vld [vmem:[#allocation8 + $0x28] sm:$0xff] }
  0x1a   :  { %336 = vmatpush.bf16.msra.mxu2 %v506_v17  ;;  %v503_v20 = vld [vmem:[#allocation8 + $0x20] sm:$0xff]  ;;  %v516_v22 = vld [vmem:[%s722_s2] ss:$0 sm:$0xff]  ;;  %v501_v30 = vld [vmem:[#allocation8 + $0x10] sm:$0xff] }
  0x1b   :  { %v502_v29 = vld [vmem:[#allocation8 + $0x18] sm:$0xff]  ;;  %v500_v31 = vld [vmem:[#allocation8 + $0x8] sm:$0xff]  ;;  %v499_v32 = vld [vmem:[#allocation8] sm:$0xff] }
  0x1c   :  { %168 = vmatpush.bf16.msra.mxu0 %v488_v4  ;;  %v517_v34 = vld [vmem:[%s724_s4] ss:$0 sm:$0xff]  ;;  %s653_s4 = smov [#allocation10]  }
  0x1d   :  { %253 = vmatpush.bf16.msra.mxu1 %v496_v5  ;;  %v518_v42 = vld [vmem:[%s726_s6] ss:$0 sm:$0xff]  ;;  %s365_s24 = sshll.u32 %s653_s4, 4  ;;  %s654_s6 = smov 128   ;;  %s366_s24 = int_to_ptr.vmem [resolvable:$true] %s365_s24 }
  0x1e   :  { %337 = vmatpush.bf16.msra.mxu2 %v505_v18 }
  0x20   :  { %169 = vmatpush.bf16.msra.mxu0 %v487_v6 }
  0x21   :  { %254 = vmatpush.bf16.msra.mxu1 %v495_v7 }
  0x22   :  { %338 = vmatpush.bf16.msra.mxu2 %v504_v19 }
  0x24   :  { %170 = vmatpush.bf16.msra.mxu0 %v486_v8 }
  0x25   :  { %255 = vmatpush.bf16.msra.mxu1 %v494_v13 }
  0x26   :  { %339 = vmatpush.bf16.msra.mxu2 %v503_v20 }
  0x28   :  { %171 = vmatpush.bf16.msra.mxu0 %v485_v9 }
  0x29   :  { %256 = vmatpush.bf16.msra.mxu1 %v493_v14 }
  0x2a   :  { %340 = vmatpush.bf16.msra.mxu2 %v502_v29 }
  0x2c   :  { %172 = vmatpush.bf16.msra.mxu0 %v484_v10 }
  0x2d   :  { %257 = vmatpush.bf16.msra.mxu1 %v492_v15 }
  0x2e   :  { %341 = vmatpush.bf16.msra.mxu2 %v501_v30 }
  0x30   :  { %173 = vmatpush.bf16.msra.mxu0 %v483_v11 }
  0x31   :  { %258 = vmatpush.bf16.msra.mxu1 %v491_v16 }
  0x32   :  { %342 = vmatpush.bf16.msra.mxu2 %v500_v31 }
  0x33   :  { %174 = vmatmul.bf16.vlgmr.msra.gmra.mxu0 %v482_v12 }
  0x36   :  { %343 = vmatpush.bf16.msra.mxu2 %v499_v32 }
  0xb0   :  { %v175_v21 = vpop.f32.mrf.mxu0 }
  0xb1   :  { %v176_v23 = vadd.f32 %v516_v22, %v175_v21 }
  0xb3   :  { %v180_v26 = vmax.f32 %v176_v23, 0.0 }
  0xb8   :  { %v177_v24 = vpop.f32.mrf.mxu0 }
  0xb9   :  { %v178_v25 = vadd.f32 %v516_v22, %v177_v24 }
  0xbb   :  { %v181_v27 = vmax.f32 %v178_v25, 0.0 }
  0xbd   :  { %v182_v28 = vpack.c.bf16 %v181_v27, %v180_v26 }
  0xbf   :  { %259 = vmatmul.bf16.vlgmr.msra.gmra.mxu1 %v182_v28 }
 0x13c   :  { %v260_v33 = vpop.f32.mrf.mxu1 }
 0x13d   :  { %v261_v35 = vadd.f32 %v517_v34, %v260_v33 }
 0x13f   :  { %v265_v38 = vmax.f32 %v261_v35, 0.0 }
 0x144   :  { %v262_v36 = vpop.f32.mrf.mxu1 }
 0x145   :  { %v263_v37 = vadd.f32 %v517_v34, %v262_v36 }
 0x147   :  { %v266_v39 = vmax.f32 %v263_v37, 0.0 }
 0x149   :  { %v267_v40 = vpack.c.bf16 %v266_v39, %v265_v38 }
 0x14b   :  { %344 = vmatmul.bf16.vlgmr.msra.gmra.mxu2 %v267_v40 }
 0x1ce   :  { %v345_v43 = vpop.f32.mrf.mxu2 }
 0x1cf   :  { %v346_v45 = vadd.f32 %v518_v42, %v345_v43 }
 0x1d1   :  { %v352_v46 = vmax.f32 %v346_v45, -20.0 }
 0x1d3   :  { %v354_v47 = vmin.f32 %v352_v46, 2.0 }
 0x1d5   :  { %v357_v48 = vsel %vm356_vm0, %v346_v45, %v354_v47 }
 0x1d6   :  { %359 = vst [vmem:[#allocation10] sm:$0xff] %v357_v48  ;;  %v347_v49 = vpop.f32.mrf.mxu2 }
 0x1d7   :  { %v348_v50 = vadd.f32 %v518_v42, %v347_v49 }
 0x1d9   :  { %v353_v51 = vmax.f32 %v348_v50, -20.0 }
 0x1db   :  { %v355_v52 = vmin.f32 %v353_v51, 2.0 }
 0x1dd   :  { %v358_v53 = vsel %vm356_vm0, %v348_v50, %v355_v52 }
 0x1de   :  { %360 = vst [vmem:[#allocation10 + $0x8] sm:$0xff] %v358_v53 }
 0x1df   :  { %373 = dma.vmem_to_hbm [thread:$0]  %s366_s24, 256, %s368_s27, [#allocation4], %s654_s6, %s654_s6, %s655_s28  }
 0x1e0   :  { %645 = dma.done.wait [#allocation4], 256  }
 0x1e1   :  { %646 = vsyncadd [#allocation4], 4294967040 }
 0x1e2   :  { %378 = vsyncpa [#allocation3], 1 }
 0x1e3   :  { %379 = vsyncpa [#allocation6], 1 }
 0x1e4   :  { %380 = vsyncpa [#allocation9], 1 }
 0x1e5   :  { %381 = vsyncpa [#allocation4], 1 }

</bundles_post_ra>
